<compile_context>
chip_gen: v7x
topology: tpu7x:2x2x1
jax: 0.10.0
libtpu: 0.0.40
codegen_flags: <defaults>
</compile_context>

<pallas_src>
import functools

import jax
import jax.numpy as jnp
from jax.experimental import pallas as pl
from jax.experimental.pallas import tpu as pltpu

_IGNORE_INDEX = -100  # nn.CrossEntropyLoss default
_LANE = 128
_SUBLANE = 8


def _round_up(x, m):
    return ((x + m - 1) // m) * m


def _round_down_to(x, m):
    return max(m, (x // m) * m)


# --------------------------------------------------------------------------
# Kernel bodies
# --------------------------------------------------------------------------

def _linear(x_ref, w_ref, b_ref):
    """f32 logits (TILE_N, LP) for one tile of tokens: x @ W_pad + b_pad."""
    logits = jnp.dot(x_ref[...], w_ref[...], preferred_element_type=jnp.float32)
    return logits + b_ref[...].astype(jnp.float32)


def _ce_partial(logits_f32, lab, num_labels):
    """Per-tile cross-entropy partials (loss_sum, valid_count) in f32."""
    col = jax.lax.broadcasted_iota(jnp.int32, logits_f32.shape, 1)     # (TN, LP)
    # Mask the padded classifier columns before the logsumexp (f32 only).
    masked = jnp.where(col < num_labels, logits_f32, jnp.float32(-1e30))
    m = jnp.max(masked, axis=-1, keepdims=True)                        # (TN, 1)
    lse = m + jnp.log(jnp.sum(jnp.exp(masked - m), axis=-1, keepdims=True))
    valid = jnp.logical_and(lab >= 0, lab < num_labels)                # (TN, 1)
    tgt = jnp.sum(jnp.where(col == lab, masked, 0.0), axis=-1, keepdims=True)
    per_row = jnp.where(valid, lse - tgt, 0.0)
    return jnp.sum(per_row), jnp.sum(valid.astype(jnp.float32))


def _store_partials(part_ref, loss_sum, valid_cnt):
    # Lane-dense partial row: lane 0 = sum of per-token losses, lane 1 = count.
    lane = jax.lax.broadcasted_iota(jnp.int32, part_ref.shape, 2)      # (1, 1, LP)
    part_ref[...] = jnp.where(lane == 0, loss_sum,
                              jnp.where(lane == 1, valid_cnt, 0.0))


def _logits_kernel(x_ref, w_ref, b_ref, logits_ref, *, num_labels):
    logits = _linear(x_ref, w_ref, b_ref)
    logits_ref[...] = logits[:, :num_labels].astype(logits_ref.dtype)


def _logits_loss_kernel(x_ref, w_ref, b_ref, lab_ref, logits_ref, part_ref,
                        *, num_labels):
    logits = _linear(x_ref, w_ref, b_ref)
    logits_ref[...] = logits[:, :num_labels].astype(logits_ref.dtype)
    loss_sum, valid_cnt = _ce_partial(logits, lab_ref[...], num_labels)
    _store_partials(part_ref, loss_sum, valid_cnt)


def _loss_only_kernel(x_ref, w_ref, b_ref, lab_ref, part_ref, *, num_labels):
    # Training-step variant: no logits HBM writeback at all.
    logits = _linear(x_ref, w_ref, b_ref)
    loss_sum, valid_cnt = _ce_partial(logits, lab_ref[...], num_labels)
    _store_partials(part_ref, loss_sum, valid_cnt)


# --------------------------------------------------------------------------
# Generation-aware planning
# --------------------------------------------------------------------------

def _vmem_capacity_bytes():
    try:
        info = pltpu.get_tpu_info()
        cap = getattr(info, "vmem_capacity_bytes", None)
        if cap:
            return int(cap)
    except Exception:
        pass
    return 64 * 2**20  # conservative (v7x-sized) fallback


def _plan_tiles(N, H, L, x_itemsize, out_itemsize, has_labels, want_logits,
                tile_n):
    vmem_cap = _vmem_capacity_bytes()
    small_vmem = vmem_cap <= 80 * 2**20             # v7x: 64 MiB physical / TC
    target_x = (6 if small_vmem else 12) * 2**20    # per-buffer x-tile bytes
    limit_cap = (48 if small_vmem else 100) * 2**20  # scoped-VMEM ceiling
    budget = limit_cap - 8 * 2**20                  # compiler headroom

    lp = _round_up(max(L, 1), _LANE)                # lane-dense classifier dim

    def footprint(t):
        fp = 2 * t * H * x_itemsize                 # double-buffered x tiles
        fp += 2 * H * lp * x_itemsize               # resident W (2 bufs, conservative)
        fp += 2 * _SUBLANE * lp * 4                 # bias
        if want_logits:
            fp += 2 * t * lp * out_itemsize         # logits tiles (lane-padded in VMEM)
        if has_labels:
            fp += 2 * t * _LANE * 4                 # label tiles (lane-padded i32)
            fp += 2 * _SUBLANE * lp * 4             # partial rows
        return fp

    if tile_n is None:
        tile = target_x // max(1, H * x_itemsize)
        tile = min(max(_SUBLANE, _round_down_to(tile, _SUBLANE)), 4096)
    else:
        tile = max(_SUBLANE, _round_up(tile_n, _SUBLANE))
    # Keep G >= 2 so the "parallel" token axis feeds both v7x TensorCores.
    tile = min(tile, max(_SUBLANE, _round_up(pl.cdiv(N, 2), _SUBLANE)))
    tile = min(tile, _round_up(N, _SUBLANE))
    # Shrink until the whole footprint fits the per-generation VMEM budget.
    while tile > _SUBLANE and footprint(tile) > budget:
        tile = _round_down_to(tile // 2, _SUBLANE)

    vmem_limit = int(min(limit_cap, max(32 * 2**20, footprint(tile) + 4 * 2**20)))
    return tile, lp, vmem_limit


# --------------------------------------------------------------------------
# Public wrapper
# --------------------------------------------------------------------------

def token_classification_head_forward(sequence_output, weight, bias,
                                      labels=None, attention_mask=None,
                                      return_logits=True,
                                      cast_activations_to_bf16=False,
                                      tile_n=None):
    """Forward of TokenClassificationHead (eval-mode dropout).

    sequence_output: (B, S, H); weight: (L, H); bias: (L,); labels: (B, S) int.
    Returns (logits, loss). With labels and return_logits=False the logits
    writeback is skipped entirely (loss-only training-step fast path) and
    logits is None.
    """
    del attention_mask  # unused by the reference forward
    B, S, H = sequence_output.shape
    L = weight.shape[0]
    N = B * S

    x = sequence_output.reshape(N, H)
    if cast_activations_to_bf16:
        x = x.astype(jnp.bfloat16)          # halves the dominant HBM read term
    compute_dtype = x.dtype
    out_dtype = sequence_output.dtype       # logits keep the caller's precision

    x_itemsize = jnp.dtype(compute_dtype).itemsize
    out_itemsize = jnp.dtype(out_dtype).itemsize
    has_labels = labels is not None
    want_logits = return_logits or not has_labels

    TILE_N, LP, vmem_limit = _plan_tiles(
        N, H, L, x_itemsize, out_itemsize, has_labels, want_logits, tile_n)
    N_pad = _round_up(N, TILE_N)
    G = N_pad // TILE_N

    if N_pad != N:
        x = jnp.pad(x, ((0, N_pad - N), (0, 0)))

    # Pad + transpose the weight ONCE (grid-invariant, lane-dense (H, LP)) and
    # cast to the compute dtype so the MXU sees e.g. bf16 x bf16 -> f32.
    w = jnp.transpose(jnp.pad(weight, ((0, LP - L), (0, 0)))).astype(compute_dtype)
    b = jnp.pad(bias, (0, LP - L)).reshape(1, LP).astype(jnp.float32)

    compiler_params = pltpu.CompilerParams(
        dimension_semantics=("parallel",),   # v7x: token tiles split across TCs
        vmem_limit_bytes=vmem_limit)

    cost = pl.CostEstimate(
        flops=2 * N_pad * H * LP,
        transcendentals=N_pad * LP if has_labels else 0,
        bytes_accessed=(N_pad * H * x_itemsize + H * LP * x_itemsize
                        + (N_pad * L * out_itemsize if want_logits else 0)
                        + (N_pad * 4 + G * LP * 4 if has_labels else 0)))

    x_spec = pl.BlockSpec((TILE_N, H), lambda i: (i, 0))
    # Grid-invariant blocks: fetched once by the pipeline (constant index_map).
    w_spec = pl.BlockSpec((H, LP), lambda i: (0, 0))
    b_spec = pl.BlockSpec((1, LP), lambda i: (0, 0))
    # Unpadded logits output: block last dim == full array dim (L), so no
    # padded (N, 128) f32 slab is written and no wrapper slice/re-read pass.
    logits_spec = pl.BlockSpec((TILE_N, L), lambda i: (i, 0))
    logits_shape = jax.ShapeDtypeStruct((N_pad, L), out_dtype)

    if not has_labels:
        logits_flat = pl.pallas_call(
            functools.partial(_logits_kernel, num_labels=L),
            grid=(G,),
            in_specs=[x_spec, w_spec, b_spec],
            out_specs=logits_spec,
            out_shape=logits_shape,
            compiler_params=compiler_params,
            cost_estimate=cost,
        )(x, w, b)
        return logits_flat[:N].reshape(B, S, L), None

    lab = labels.reshape(N).astype(jnp.int32)
    if N_pad != N:
        lab = jnp.pad(lab, (0, N_pad - N), constant_values=_IGNORE_INDEX)
    lab = lab.reshape(N_pad, 1)
    lab_spec = pl.BlockSpec((TILE_N, 1), lambda i: (i, 0))

    # Per-tile partials (lane 0 = loss sum, lane 1 = valid count): keeps the
    # token axis "parallel"; the final mean is a tiny wrapper reduction.
    part_spec = pl.BlockSpec((1, 1, LP), lambda i: (i, 0, 0))
    part_shape = jax.ShapeDtypeStruct((G, 1, LP), jnp.float32)

    if return_logits:
        logits_flat, partials = pl.pallas_call(
            functools.partial(_logits_loss_kernel, num_labels=L),
            grid=(G,),
            in_specs=[x_spec, w_spec, b_spec, lab_spec],
            out_specs=(logits_spec, part_spec),
            out_shape=(logits_shape, part_shape),
            compiler_params=compiler_params,
            cost_estimate=cost,
        )(x, w, b, lab)
        logits = logits_flat[:N].reshape(B, S, L)
    else:
        partials = pl.pallas_call(
            functools.partial(_loss_only_kernel, num_labels=L),
            grid=(G,),
            in_specs=[x_spec, w_spec, b_spec, lab_spec],
            out_specs=part_spec,
            out_shape=part_shape,
            compiler_params=compiler_params,
            cost_estimate=cost,
        )(x, w, b, lab)
        logits = None

    # NOTE: a batch with zero valid labels gives 0/0 = NaN (PyTorch 'mean').
    loss = jnp.sum(partials[:, 0, 0]) / jnp.sum(partials[:, 0, 1])
    return logits, loss


if __name__ == "__main__":
    # Small shapes implied by the module: (batch, seq, hidden) token features.
    B, S, H, L = 2, 8, 32, 5

    key = jax.random.PRNGKey(0)
    k_x, k_w, k_lab = jax.random.split(key, 3)

    sequence_output = jax.random.normal(k_x, (B, S, H), dtype=jnp.float32)
    pooled_output = jnp.mean(sequence_output, axis=1)  # parity with module signature

    # Deterministic parameter init matching _init_weights(): N(0, 0.02), bias 0.
    weight = 0.02 * jax.random.normal(k_w, (L, H), dtype=jnp.float32)
    bias = jnp.zeros((L,), dtype=jnp.float32)

    labels = jax.random.randint(k_lab, (B, S), 0, L, dtype=jnp.int32)
    # Exercise the ignore_index=-100 path (padding tokens excluded from the mean).
    labels = labels.at[0, -2:].set(_IGNORE_INDEX)

    # (1) logits + loss (module-equivalent forward)
    logits, loss = token_classification_head_forward(
        sequence_output, weight, bias, labels)
    logits = jax.block_until_ready(logits)
    loss = jax.block_until_ready(loss)

    # (2) loss-only fast path (no logits HBM writeback)
    logits_lo, loss_lo = token_classification_head_forward(
        sequence_output, weight, bias, labels, return_logits=False)
    loss_lo = jax.block_until_ready(loss_lo)

    # (3) inference (no labels)
    logits_nl, loss_nl = token_classification_head_forward(
        sequence_output, weight, bias, None)
    logits_nl = jax.block_until_ready(logits_nl)

    # (4) bf16-activation loss-only variant (halves x HBM traffic)
    _, loss_bf16 = token_classification_head_forward(
        sequence_output, weight, bias, labels, return_logits=False,
        cast_activations_to_bf16=True)
    loss_bf16 = jax.block_until_ready(loss_bf16)

    # Plain-JAX reference.
    ref_logits = jnp.einsum("bsh,lh->bsl", sequence_output, weight) + bias
    flat = ref_logits.reshape(-1, L)
    lab_flat = labels.reshape(-1)
    valid = lab_flat >= 0
    lse = jax.scipy.special.logsumexp(flat, axis=-1)
    tgt = flat[jnp.arange(B * S), jnp.clip(lab_flat, 0, L - 1)]
    ref_loss = jnp.sum(jnp.where(valid, lse - tgt, 0.0)) / jnp.sum(valid)

    assert jnp.allclose(logits, ref_logits, atol=1e-5), "logits mismatch"
    assert jnp.allclose(logits_nl, ref_logits, atol=1e-5), "logits mismatch (no labels)"
    assert loss_nl is None and logits_lo is None
    assert jnp.allclose(loss, ref_loss, atol=1e-5), "loss mismatch"
    assert jnp.allclose(loss_lo, ref_loss, atol=1e-5), "loss-only mismatch"
    assert bool(jnp.isfinite(loss_bf16)), "bf16 loss not finite"
    assert jnp.allclose(loss_bf16, ref_loss, atol=5e-2), "bf16 loss mismatch"

    print("KERNEL_OK")
</pallas_src>

<mosaic_0001>
module attributes {stable_mosaic.version = 11 : i64} {
  func.func @_logits_loss_kernel(%arg0: i32, %arg1: memref<8x32xf32, #tpu.memory_space<vmem>>, %arg2: memref<32x128xf32, #tpu.memory_space<vmem>>, %arg3: memref<1x128xf32, #tpu.memory_space<vmem>>, %arg4: memref<8x1xi32, #tpu.memory_space<vmem>>, %arg5: memref<8x5xf32, #tpu.memory_space<vmem>>, %arg6: memref<1x1x128xf32, #tpu.memory_space<vmem>>) attributes {dimension_semantics = [#tpu.dimension_semantics<parallel>], iteration_bounds = array<i64: 2>, scalar_prefetch = 0 : i64, scratch_operands = 0 : i64, tpu.core_type = #tpu.core_type<tc>, window_params = [{transform_indices = @transform_0, window_bounds = array<i64: 8, 32>}, {pipeline_mode = #tpu.pipeline_mode<synchronous>, transform_indices = @transform_1, window_bounds = array<i64: 32, 128>}, {pipeline_mode = #tpu.pipeline_mode<synchronous>, transform_indices = @transform_2, window_bounds = array<i64: 1, 128>}, {transform_indices = @transform_3, window_bounds = array<i64: 8, 1>}, {transform_indices = @transform_4, window_bounds = array<i64: 8, 5>}, {transform_indices = @transform_5, window_bounds = array<i64: 1, 1, 128>}]} {
    %c0 = arith.constant 0 : index
    %c0_0 = arith.constant 0 : index
    %0 = vector.load %arg1[%c0, %c0_0] : memref<8x32xf32, #tpu.memory_space<vmem>>, vector<8x32xf32>
    %c0_1 = arith.constant 0 : index
    %c0_2 = arith.constant 0 : index
    %1 = vector.load %arg2[%c0_1, %c0_2] : memref<32x128xf32, #tpu.memory_space<vmem>>, vector<32x128xf32>
    %cst = arith.constant dense<0.000000e+00> : vector<8x128xf32>
    %2 = tpu.matmul %0, %1, %cst {dimension_numbers = #tpu.dot_dimension_numbers<[1], [0], [0], [1], [0, 0, 1, 1], [], []>} : vector<8x32xf32>, vector<32x128xf32>, vector<8x128xf32> -> vector<8x128xf32>
    %c0_3 = arith.constant 0 : index
    %c0_4 = arith.constant 0 : index
    %3 = vector.load %arg3[%c0_3, %c0_4] : memref<1x128xf32, #tpu.memory_space<vmem>>, vector<1x128xf32>
    %4 = vector.broadcast %3 : vector<1x128xf32> to vector<8x128xf32>
    %5 = arith.addf %2, %4 : vector<8x128xf32>
    %6 = vector.extract_strided_slice %5 {offsets = [0, 0], sizes = [8, 5], strides = [1, 1]} : vector<8x128xf32> to vector<8x5xf32>
    %c0_5 = arith.constant 0 : index
    %c0_6 = arith.constant 0 : index
    %7 = vector.load %arg5[%c0_5, %c0_6] : memref<8x5xf32, #tpu.memory_space<vmem>>, vector<8x5xf32>
    tpu.vector_store %arg5[%c0_5, %c0_6], %6 {strides = array<i32>} : memref<8x5xf32, #tpu.memory_space<vmem>>, vector<8x5xf32>,
    %c0_7 = arith.constant 0 : index
    %c0_8 = arith.constant 0 : index
    %8 = vector.load %arg4[%c0_7, %c0_8] : memref<8x1xi32, #tpu.memory_space<vmem>>, vector<8x1xi32>
    %9 = tpu.iota {dimensions = array<i32: 1>} : vector<8x128xi32>
    %c5_i32 = arith.constant 5 : i32
    %10 = vector.broadcast %c5_i32 : i32 to vector<8x128xi32>
    %11 = arith.cmpi slt, %9, %10 : vector<8x128xi32>
    %cst_9 = arith.constant -1.000000e+30 : f32
    %12 = vector.broadcast %cst_9 : f32 to vector<8x128xf32>
    %13 = arith.select %11, %5, %12 : vector<8x128xi1>, vector<8x128xf32>
    %cst_10 = arith.constant dense<0xFF800000> : vector<8xf32>
    %14 = vector.multi_reduction <maximumf>, %13, %cst_10 [1] : vector<8x128xf32> to vector<8xf32>
    %15 = vector.shape_cast %14 : vector<8xf32> to vector<8x1xf32>
    %16 = vector.broadcast %15 : vector<8x1xf32> to vector<8x128xf32>
    %17 = arith.subf %13, %16 : vector<8x128xf32>
    %18 = math.exp %17 : vector<8x128xf32>
    %cst_11 = arith.constant dense<0.000000e+00> : vector<8xf32>
    %19 = vector.multi_reduction <add>, %18, %cst_11 [1] : vector<8x128xf32> to vector<8xf32>
    %20 = vector.shape_cast %19 : vector<8xf32> to vector<8x1xf32>
    %21 = math.log %20 : vector<8x1xf32>
    %22 = arith.addf %15, %21 : vector<8x1xf32>
    %c0_i32 = arith.constant 0 : i32
    %23 = vector.broadcast %c0_i32 : i32 to vector<8x1xi32>
    %24 = arith.cmpi sge, %8, %23 : vector<8x1xi32>
    %c5_i32_12 = arith.constant 5 : i32
    %25 = vector.broadcast %c5_i32_12 : i32 to vector<8x1xi32>
    %26 = arith.cmpi slt, %8, %25 : vector<8x1xi32>
    %27 = arith.andi %24, %26 : vector<8x1xi1>
    %28 = vector.broadcast %8 : vector<8x1xi32> to vector<8x128xi32>
    %29 = arith.cmpi eq, %9, %28 : vector<8x128xi32>
    %cst_13 = arith.constant 0.000000e+00 : f32
    %30 = vector.broadcast %cst_13 : f32 to vector<8x128xf32>
    %31 = arith.select %29, %13, %30 : vector<8x128xi1>, vector<8x128xf32>
    %cst_14 = arith.constant dense<0.000000e+00> : vector<8xf32>
    %32 = vector.multi_reduction <add>, %31, %cst_14 [1] : vector<8x128xf32> to vector<8xf32>
    %33 = vector.shape_cast %32 : vector<8xf32> to vector<8x1xf32>
    %34 = arith.subf %22, %33 : vector<8x1xf32>
    %cst_15 = arith.constant 0.000000e+00 : f32
    %35 = vector.broadcast %cst_15 : f32 to vector<8x1xf32>
    %36 = arith.select %27, %34, %35 : vector<8x1xi1>, vector<8x1xf32>
    %37 = vector.shape_cast %36 : vector<8x1xf32> to vector<1x8x1xf32>
    %cst_16 = arith.constant dense<0.000000e+00> : vector<1xf32>
    %38 = vector.multi_reduction <add>, %37, %cst_16 [1, 2] : vector<1x8x1xf32> to vector<1xf32>
    %39 = vector.shape_cast %38 : vector<1xf32> to vector<1x1x1xf32>
    %40 = vector.extract %39[0, 0, 0] : f32 from vector<1x1x1xf32>
    %41 = arith.extui %27 : vector<8x1xi1> to vector<8x1xi32>
    %42 = arith.sitofp %41 : vector<8x1xi32> to vector<8x1xf32>
    %43 = vector.shape_cast %42 : vector<8x1xf32> to vector<1x8x1xf32>
    %cst_17 = arith.constant dense<0.000000e+00> : vector<1xf32>
    %44 = vector.multi_reduction <add>, %43, %cst_17 [1, 2] : vector<1x8x1xf32> to vector<1xf32>
    %45 = vector.shape_cast %44 : vector<1xf32> to vector<1x1x1xf32>
    %46 = vector.extract %45[0, 0, 0] : f32 from vector<1x1x1xf32>
    %47 = tpu.iota {dimensions = array<i32: 2>} : vector<1x1x128xi32>
    %c0_i32_18 = arith.constant 0 : i32
    %48 = vector.broadcast %c0_i32_18 : i32 to vector<1x1x128xi32>
    %49 = arith.cmpi eq, %47, %48 : vector<1x1x128xi32>
    %c1_i32 = arith.constant 1 : i32
    %50 = vector.broadcast %c1_i32 : i32 to vector<1x1x128xi32>
    %51 = arith.cmpi eq, %47, %50 : vector<1x1x128xi32>
    %cst_19 = arith.constant 0.000000e+00 : f32
    %52 = vector.broadcast %46 : f32 to vector<1x1x128xf32>
    %53 = vector.broadcast %cst_19 : f32 to vector<1x1x128xf32>
    %54 = arith.select %51, %52, %53 : vector<1x1x128xi1>, vector<1x1x128xf32>
    %55 = vector.broadcast %40 : f32 to vector<1x1x128xf32>
    %56 = arith.select %49, %55, %54 : vector<1x1x128xi1>, vector<1x1x128xf32>
    %c0_20 = arith.constant 0 : index
    %c0_21 = arith.constant 0 : index
    %c0_22 = arith.constant 0 : index
    %57 = vector.load %arg6[%c0_20, %c0_21, %c0_22] : memref<1x1x128xf32, #tpu.memory_space<vmem>>, vector<1x1x128xf32>
    tpu.vector_store %arg6[%c0_20, %c0_21, %c0_22], %56 {strides = array<i32>} : memref<1x1x128xf32, #tpu.memory_space<vmem>>, vector<1x1x128xf32>,
    return
  }
  func.func @transform_0(%arg0: i32) -> (i32, i32) {
    %c0_i32 = arith.constant 0 : i32
    %c0_i32_0 = arith.constant 0 : i32
    return %arg0, %c0_i32 : i32, i32
  }
  func.func @transform_1(%arg0: i32) -> (i32, i32) {
    %c0_i32 = arith.constant 0 : i32
    %c0_i32_0 = arith.constant 0 : i32
    %c0_i32_1 = arith.constant 0 : i32
    return %c0_i32, %c0_i32_0 : i32, i32
  }
  func.func @transform_2(%arg0: i32) -> (i32, i32) {
    %c0_i32 = arith.constant 0 : i32
    %c0_i32_0 = arith.constant 0 : i32
    %c0_i32_1 = arith.constant 0 : i32
    return %c0_i32, %c0_i32_0 : i32, i32
  }
  func.func @transform_3(%arg0: i32) -> (i32, i32) {
    %c0_i32 = arith.constant 0 : i32
    %c0_i32_0 = arith.constant 0 : i32
    return %arg0, %c0_i32 : i32, i32
  }
  func.func @transform_4(%arg0: i32) -> (i32, i32) {
    %c0_i32 = arith.constant 0 : i32
    %c0_i32_0 = arith.constant 0 : i32
    return %arg0, %c0_i32 : i32, i32
  }
  func.func @transform_5(%arg0: i32) -> (i32, i32, i32) {
    %c0_i32 = arith.constant 0 : i32
    %c0_i32_0 = arith.constant 0 : i32
    %c0_i32_1 = arith.constant 0 : i32
    return %arg0, %c0_i32, %c0_i32_0 : i32, i32, i32
  }
}

</mosaic_0001>

<bundles_post_ra>
// kernel: tpu_custom_call.1
= control target key start
LH: loop header
LB: loop body
LE: loop exit
PB: predicated region body
PF: predicated region fallthrough
CT: control target
= control target key end

     0   :  { %11 = vsyncpa [#allocation3], 0  ;;  %s916_s0 = inlined_call_operand.vmem [shape: f32[16,32], index: 0, kind: input, shape index: {}]   ;;  %s917_s1 = inlined_call_operand.hbm [shape: f32[32,128], index: 1, kind: input, shape index: {}]   ;;  %s918_s2 = inlined_call_operand.vmem [shape: f32[1,128], index: 2, kind: input, shape index: {}]   ;;  %s919_s3 = inlined_call_operand.vmem [shape: s32[16,1], index: 3, kind: input, shape index: {}]   ;;  %s920_s4 = inlined_call_operand.vmem [shape: f32[16,5], index: 4, kind: output, shape index: {0}]   ;;  %s921_s5 = inlined_call_operand.hbm [shape: f32[2,1,128], index: 5, kind: output, shape index: {1}]  }
   0x1   :  { %12 = vsyncpa [#allocation4], 0 }
   0x2   :  { %14 = vsyncpa [#allocation4 + $0x1], 0  ;;  %s766_s18 = smov 0   ;;  %s768_s19 = smov 0  }
   0x3   :  { %s770_s20 = smov 0   ;;  %s772_s21 = smov 0  }
   0x4 LB: > { %s787_s22 = sadd.s32 4294967295, %s726_s21   ;;  %s530_s23 = sadd.s32 4294967294, %s726_s21   ;;  %s726_s21 = sphi %s772_s21, %s937_s21   ;;  %s722_s20 = sphi %s770_s20, %s936_s20   ;;  %s718_s19 = sphi %s768_s19, %s935_s19   ;;  %s714_s18 = sphi %s766_s18, %s934_s18  }
   0x5   : > { %s791_s24 = sadd.s32 1, %s726_s21   ;;  %s147_s25 = sadd.s32 1, %s722_s20 }
   0x6   : > { %s144_s26 = ssub.s32 %s726_s21, %s791_s24  ;;  %p157_p0 = scmp.ne.s32.totalorder %s722_s20, %s718_s19 }
   0x7   : > { %p145_p1 = scmp.eq.s32.totalorder %s144_s26, 0  ;;  %p158_p2 = scmp.eq.s32.totalorder %s787_s22, 1 }
   0x8   : > { %p163_p3 = scmp.ne.s32.totalorder %s718_s19, %s714_s18  ;;  %p164_p4 = scmp.eq.s32.totalorder %s530_s23, 1 }
   0x9   : > { %s802_s27 = scalar_select %p145_p1, %s722_s20, %s147_s25  }
   0xa   : > { %p804_p5 = por %p158_p2, %p157_p0  ;;  %p808_p6 = por %p164_p4, %p163_p3 }
   0xb   : > { %p531_p7 = scmp.ge.s32.totalorder %s726_s21, 1  ;;  %p171_p8 = scmp.lt.s32.totalorder %s726_s21, 3 }
   0xc   : > { %s925_s28 = scalar_select %p804_p5, 1, 0 }
   0xd   : > { %s926_s29 = scalar_select %p808_p6, 1, 0 }
   0xe   : > { %p922_p9 = scmp.eq.s32.totalorder %s787_s22, 0  ;;  %p815_p10 = pnand %p531_p7, %p171_p8 }
   0xf   : > { %s728_s6 = smov [#allocation2]   ;;  %s632_s11 = scalar_lea.hbm %s917_s1, 512 }
  0x10   : > { %s927_s30 = scalar_select %p815_p10, 1, 0 }
  0x11   : > { %s183_s7 = sshll.u32 %s728_s6, 4  ;;  %p577_p11 = pneg %p815_p10  ;;  %s184_s7 = int_to_ptr.vmem [resolvable:$true] %s183_s7 }
  0x12   : > { %p633_p13 = scmp.ne.s32.totalorder %s917_s1, %s632_s11  ;;  %p639_p3 = scmp.lt.u32.totalorder %s632_s11, %s917_s1 }
  0x13   : > { %p823_p12 = pnand %p922_p9, %p577_p11 }
  0x15   : > { %p634_p0 = pneg %p823_p12 }
  0x17   : > { %p635_p1 = pnand %p634_p0, %p633_p13 }
  0x19   : > { %p636_p2 = pneg %p635_p1 }
  0x1b   : > { %p641_p4 = pnand %p639_p3, %p636_p2 }
  0x1d   : > { %644 = shalt.err (!%p641_p4)
}
  0x1e   : > { %s645_s16 = scalar_lea.vmem %s184_s7, 512  ;;  %p653_p9 = scmp.lt.s32.totalorder %s184_s7, %s184_s7 }
  0x1f   : > { %p646_p7 = scmp.ne.s32.totalorder %s184_s7, %s645_s16  ;;  %p654_p6 = scmp.lt.s32.totalorder %s645_s16, %s645_s16 }
  0x21   : > { %p648_p8 = pnand %p646_p7, %p634_p0  ;;  %p655_p5 = por %p654_p6, %p653_p9 }
  0x23   : > { %p649_p11 = pneg %p648_p8 }
  0x25   : > { %p656_p10 = pnand %p655_p5, %p649_p11 }
  0x27   : > { %659 = shalt.err (!%p656_p10)
}
  0x28   : > { %s729_s17 = smov 128   ;;  %s730_s23 = smov 8  }
  0x29   : > { %580 = dma.hbm_to_vmem [thread:$0]  (!%p823_p12), %s917_s1, 512, %s184_s7, [#allocation3], %s729_s17, %s729_s17, %s730_s23  }
  0x2a   : > { %p929_p13 = scmp.ne.s32.totalorder %s927_s30, 0 }
  0x2b   : > { %p930_p1 = scmp.eq.s32.totalorder (!%p929_p13), %s787_s22, 0 }
  0x2c   : > { %216 = sbr.rel (%p929_p13) target bundleno = 820 (0x334), region = 36 }
  0x33   : > { %705 = dma.done.wait (%p930_p1), [#allocation3], 512   ;;  %p931_p0 = pmov %p930_p1 }
  0x34   : > { %p250_p5 = scmp.lt.s32.totalorder %s787_s22, 1  ;;  %v731_v0 = vmov 0.0|0.0   ;;  %vm732_vm0 = vmmov 0   ;;  %v733_v1 = vmov 0.0   ;;  %v263_v2 = vld [vmem:[#allocation2] sm:$0xff]  ;;  %v264_v3 = vld [vmem:[#allocation2 + $0x8] sm:$0xff]  ;;  %v351_v10 = vlaneseq }
  0x35   : > { %707 = vsyncadd (%p931_p0), [#allocation3], 4294966784  ;;  %561 = vmatprep.subr.bf16.mxu0 %v731_v0  ;;  %558 = vmatprep.mubr.msk.f32.mxu0 %vm732_vm0, %v733_v1  ;;  %v265_v4 = vld [vmem:[#allocation2 + $0x10] sm:$0xff]  ;;  %v562_v5 = vpack.c.bf16 %v264_v3, %v263_v2  ;;  %v266_v6 = vld [vmem:[#allocation2 + $0x18] sm:$0xff]  ;;  %vm274_vm1 = vcmask 261120   ;;  %v734_v9 = vmov 0  }
  0x36   : > { %s251_s6 = scalar_select %p250_p5, %s787_s22, 1  ;;  %v565_v7 = vpack.c.bf16 %v266_v6, %v265_v4  ;;  %627 = vset.pattern.permute.xlu0 %v734_v9  ;;  %v854_v11 = vand.u32 127, %v351_v10  ;;  %v539_v12 = vld [vmem:[%s918_s2] ss:$0 sm:$0xff]  ;;  %vm348_vm2 = vcmask 39936   ;;  %vm377_vm8 = vcmask 7168  }
  0x37   : > { %563 = vmatpush3.bf16.msra.mxu0 %v562_v5  ;;  %s248_s23 = sand.u32 1, %s718_s19   ;;  %s542_s25 = sshll.u32 %s787_s22, 4 }
  0x38   : > { %s536_s30 = sshll.u32 %s251_s6, 3  ;;  %564 = vmatprep.subr.bf16.mxu0 %v731_v0  ;;  %vm353_vm3 = vcmp.lt.s32.totalorder %v854_v11, 5  ;;  %vm401_vm9 = vcmp.eq.s32.totalorder %v854_v11, 1  ;;  %s249_s6 = scalar_lea.vmem [#allocation5], %s248_s23  ;;  %vm400_vm10 = vcmp.eq.s32.totalorder %v854_v11, 0 }
  0x39   : > { %s253_s9 = scalar_lea.vmem %s916_s0, %s536_s30  ;;  %s261_s14 = scalar_lea.vmem %s920_s4, %s536_s30 }
  0x3a   : > { %v262_v8 = vld [vmem:[%s253_s9] sm:$0xff]  ;;  %s257_s17 = scalar_lea.vmem %s919_s3, %s536_s30  ;;  %s427_s30 = sshll.u32 %s249_s6, 4  ;;  %s876_s30 = int_to_ptr.vmem [resolvable:$true] %s427_s30 }
  0x3b   : > { %566 = vmatpush3.bf16.msra.mxu0 %v565_v7  ;;  %v350_v17 = vld [vmem:[%s257_s17] sm:$0xff]  ;;  %s874_s10 = scalar_lea.hbm %s921_s5, %s542_s25  ;;  %s412_s22 = scalar_lea.sflag [#allocation4], %s248_s23 }
  0x3c   : > { %vm365_vm5 = vcmp.ge.s32.totalorder %v350_v17, 0  ;;  %vm366_vm6 = vcmp.lt.s32.totalorder %v350_v17, 5  ;;  %s660_s11 = scalar_lea.vmem %s876_s30, 16  ;;  %p932_p9 = scmp.ne.s32.totalorder %s925_s28, 0 }
  0x3d   : > { %vm367_vm7 = vmand %vm365_vm5, %vm366_vm6  ;;  %p661_p6 = scmp.ne.s32.totalorder %s876_s30, %s660_s11  ;;  %s735_s12 = smov [#allocation5]  }
  0x3e   : > { %559 = vmatmul.mubr.msk.f32.vlgmr.msra.gmra.mrb[0].mxu0 %vm274_vm1, %v262_v8  ;;  %v541_v31 = vsel %vm367_vm7, 1.0, %v733_v1  ;;  %s664_s13 = sshll.u32 %s735_s12, 4  ;;  %s665_s13 = int_to_ptr.vmem [resolvable:$false] %s664_s13 }
  0x3f   : > { %v390_v33 = vsel %vm377_vm8, %v541_v31, 0.0  ;;  %p662_p10 = pnand %p661_p6, %p932_p9  ;;  %p667_p2 = scmp.lt.s32.totalorder %s876_s30, %s665_s13 }
  0x41   : > { %p663_p12 = pneg %p662_p10 }
 0x111   : > { %v344_v13 = vpop.f32.mrb[0].mxu0 }
 0x112   : > { %v345_v14 = vadd.f32 %v539_v12, %v344_v13  ;;  %v560_v15 = vpop.f32.mrb[1].mxu0 }
 0x114   : > { %349 = vst.msk [vmem:[%s261_s14] sm:$0xff] %vm348_vm2, %v345_v14  ;;  %v354_v16 = vsel %vm353_vm3, %v345_v14, -1e+30  ;;  %s666_s14 = scalar_lea.vmem %s665_s13, 32 }
 0x115   : > { %355 = vmax.xlane.f32.xlu0 %v354_v16  ;;  %p668_p3 = scmp.lt.s32.totalorder %s666_s14, %s660_s11 }
 0x117   : > { %p669_p4 = por %p668_p3, %p667_p2 }
 0x119   : > { %p670_p7 = pnand %p669_p4, %p663_p12 }
 0x12b   : > { %369 = vperm.xlu0 %627, %v350_v17  }
 0x1a2   : > { %v356_v18 = vpop.xlane.xlu0 %355 }
 0x1a3   : > { %v357_v19 = vsub.f32 %v354_v16, %v356_v18 }
 0x1a5   : > { %v358_v20 = vmul.f32 1.442695, %v357_v19 }
 0x1a7   : > { %628 = vpow2.f32 %v358_v20 }
 0x1aa   : > { %v370_v21 = vpop.permute.xlu0 %369 }
 0x1ab   : > { %vm371_vm4 = vcmp.eq.s32.totalorder %v854_v11, %v370_v21 }
 0x1ac   : > { %v372_v23 = vsel %vm371_vm4, %v354_v16, 0.0 }
 0x1b1   : > { %v629_v22 = vpop.eup %628 }
 0x1b2   : > { %360 = vadd.xlane.f32.xlu1 %v629_v22 }
 0x1b6   : > { %373 = vadd.xlane.f32.xlu1 %v372_v23 }
 0x23f   : > { %v361_v24 = vpop.xlane.xlu1 %360 }
 0x240   : > { %630 = vlog2.f32 %v361_v24 }
 0x243   : > { %v374_v28 = vpop.xlane.xlu1 %373 }
 0x24a   : > { %v631_v25 = vpop.eup %630 }
 0x24b   : > { %v363_v26 = vmul.f32 0.6931472, %v631_v25 }
 0x24d   : > { %v364_v27 = vadd.f32 %v363_v26, %v356_v18 }
 0x24f   : > { %v375_v29 = vsub.f32 %v364_v27, %v374_v28 }
 0x251   : > { %v376_v30 = vsel %vm367_vm7, %v375_v29, 0.0 }
 0x252   : > { %v378_v32 = vsel %vm377_vm8, %v376_v30, 0.0 }
 0x253   : > { %379 = vadd.xlane.f32.xlu1 %v378_v32 }
 0x257   : > { %391 = vadd.xlane.f32.xlu1 %v390_v33 }
 0x2e0   : > { %v380_v34 = vpop.xlane.xlu1 %379 }
 0x2e1   : > { %v381_v35 = vrot.slane %v380_v34, 4 }
 0x2e3   : > { %v382_v36 = vadd.f32 %v381_v35, %v380_v34 }
 0x2e4   : > { %v392_v37 = vpop.xlane.xlu1 %391 }
 0x2e5   : > { %v383_v38 = vrot.slane %v382_v36, 2  ;;  %v393_v39 = vrot.slane %v392_v37, 4 }
 0x2e7   : > { %v394_v40 = vadd.f32 %v393_v39, %v392_v37  ;;  %v384_v41 = vadd.f32 %v383_v38, %v382_v36 }
 0x2e9   : > { %v395_v42 = vrot.slane %v394_v40, 2  ;;  %v385_v43 = vrot.slane %v384_v41, 1 }
 0x2eb   : > { %v396_v44 = vadd.f32 %v395_v42, %v394_v40  ;;  %v386_v45 = vadd.f32 %v385_v43, %v384_v41 }
 0x2ed   : > { %567 = vpush %v386_v45  ;;  %v397_v46 = vrot.slane %v396_v44, 1 }
 0x2ef   : > { %v398_v47 = vadd.f32 %v397_v46, %v396_v44 }
 0x2f1   : > { %569 = vpush %v398_v47 }
 0x31e   : > { %s568_s26 = spop %567 }
 0x31f   : > { %v404_v49 = vstv %s568_s26 }
 0x322   : > { %s570_s7 = spop %569 }
 0x323   : > { %v402_v48 = vstv %s570_s7 }
 0x324   : > { %v403_v50 = vsel %vm401_vm9, %v402_v48, 0.0 }
 0x325   : > { %v405_v51 = vsel %vm400_vm10, %v404_v49, %v403_v50 }
 0x326   : > { %406 = vst [vmem:[%s249_s6] sm:$0x1] %v405_v51 }
 0x327   : > { %673 = shalt.err (!%p670_p7)
}
 0x328   : > { %s674_s15 = scalar_lea.hbm %s874_s10, 16  ;;  %s678_s23 = scalar_lea.hbm %s921_s5, 32 }
 0x329   : > { %p675_p8 = scmp.ne.s32.totalorder %s874_s10, %s674_s15  ;;  %p679_p1 = scmp.lt.u32.totalorder %s874_s10, %s921_s5 }
 0x32a   : > { %p680_p0 = scmp.lt.u32.totalorder %s678_s23, %s674_s15  ;;  %p682_p6 = scmp.lt.u32.totalorder %s674_s15, %s874_s10 }
 0x32b   : > { %p676_p11 = pnand %p675_p8, %p932_p9 }
 0x32c   : > { %p681_p5 = por %p680_p0, %p679_p1 }
 0x32d   : > { %p677_p13 = pneg %p676_p11 }
 0x32e   : > { %p683_p10 = por %p682_p6, %p681_p5 }
 0x330   : > { %p684_p12 = pnand %p683_p10, %p677_p13 }
 0x332   : > { %687 = shalt.err (!%p684_p12)
}
 0x333   : > { %575 = dma.vmem_to_hbm [thread:$0]  (%p932_p9), %s876_s30, 16, %s874_s10, %s412_s22  }
 0x334 PF: > { %p587_p2 = scmp.ge.s32.totalorder %s726_s21, 2  ;;  %s446_s6 = sand.u32 1, %s714_s18  }
 0x335   : > { %p933_p3 = scmp.ne.s32.totalorder %s926_s29, 0  ;;  %s447_s7 = scalar_lea.sflag [#allocation4], %s446_s6 }
 0x337   : > { %p582_p4 = pnand %p587_p2, %p933_p3 }
 0x339   : > { %709 = dma.done.wait (!%p582_p4), %s447_s7, 16  }
 0x33a   : > { %711 = vsyncadd (!%p582_p4), %s447_s7, 4294967280  ;;  %p17_p7 = scmp.ge.s32.totalorder %s791_s24, 4   ;;  %s934_s18 = smov %s718_s19 }
 0x33b   : > { %s935_s19 = smov %s722_s20  ;;  %s936_s20 = smov %s802_s27 }
 0x33c   : > { %s937_s21 = smov %s791_s24  ;;  %19 = sbr.rel (!%p17_p7) target bundleno = 4 (0x4), region = 91 }
 0x343   :  { %451 = vsyncpa [#allocation3], 1 }
 0x344   :  { %453 = vsyncpa [#allocation3 + $0x1], 1 }
 0x345   :  { %454 = vsyncpa [#allocation4], 1 }
 0x346   :  { %456 = vsyncpa [#allocation4 + $0x1], 1 }

</bundles_post_ra>
